<compile_context>
chip_gen: v5e
topology: v5e:2x2
jax: 0.10.0
libtpu: 0.0.40
codegen_flags: <defaults>
</compile_context>

<pallas_src>
import functools

import jax
import jax.numpy as jnp
from jax.experimental import pallas as pl
from jax.experimental.pallas import tpu as pltpu

LANES = 128        # vreg lane width; last dim of every block
CHUNK_ROWS = 128   # rows of the (rows, 128) slab processed per inner step:
                   # (128, 128) f32 = 16 vregs per live value, so the whole
                   # softplus chain stays inside the 64-vreg file.


def _bbce_kernel(pred_ref, gt_ref, out_ref, acc_gt, acc_neg, acc_pos, *,
                 total_valid: int, has_partial: bool):
    """Accumulate the three sufficient statistics of the balanced BCE loss.

        sp      = softplus(-x)             (numerically stable)
        sum_gt  = sum(y)
        sum_neg = sum((1 - y) * (x + sp))  # (1 - y) * softplus(x)
        sum_pos = sum(y * sp)              # y * softplus(-x)

    pos_weight / w_neg / mean are combined in the (tiny) JAX wrapper.
    """
    i = pl.program_id(1)                 # sequential reduction axis
    n_steps = pl.num_programs(1)
    tile_rows, lanes = pred_ref.shape

    @pl.when(i == 0)
    def _init():
        acc_gt[...] = jnp.zeros_like(acc_gt)
        acc_neg[...] = jnp.zeros_like(acc_neg)
        acc_pos[...] = jnp.zeros_like(acc_pos)

    block = pl.program_id(0) * n_steps + i
    block_row0 = block * tile_rows

    def _add_into(acc_ref, vals):
        # Fold a (r, lanes) chunk into the (8, lanes) accumulator with pure
        # full-vreg VALU adds; sublane + lane reduction is deferred to the
        # wrapper (it runs once on the packed output).
        r = vals.shape[0]
        if r % 8 == 0:
            acc_ref[...] += jnp.sum(vals.reshape(r // 8, 8, lanes), axis=0)
        else:  # tiny-remainder path (inputs folding to < 8 rows)
            acc_ref[0:1, :] += jnp.sum(vals, axis=0, keepdims=True)

    def _consume_chunk(row_off, nrows, masked):
        x = pred_ref[pl.ds(row_off, nrows), :].astype(jnp.float32)
        y = gt_ref[pl.ds(row_off, nrows), :].astype(jnp.float32)
        sp = jnp.log1p(jnp.exp(-jnp.abs(x))) + jnp.maximum(-x, 0.0)  # softplus(-x)
        t_gt = y
        t_pos = y * sp
        t_neg = (1.0 - y) * (x + sp)
        if masked:
            # Element-granularity validity mask (flat index < total_valid).
            # Only traced/executed for the single partially-OOB block, so the
            # garbage tail (stale VMEM or wrapper padding) contributes zero.
            gr = (block_row0 + row_off
                  + jax.lax.broadcasted_iota(jnp.int32, (nrows, lanes), 0))
            gl = jax.lax.broadcasted_iota(jnp.int32, (nrows, lanes), 1)
            valid = gr * lanes + gl < total_valid
            t_gt = jnp.where(valid, t_gt, 0.0)
            t_pos = jnp.where(valid, t_pos, 0.0)
            t_neg = jnp.where(valid, t_neg, 0.0)
        _add_into(acc_gt, t_gt)
        _add_into(acc_pos, t_pos)
        _add_into(acc_neg, t_neg)

    n_full, rem = divmod(tile_rows, CHUNK_ROWS)

    def _consume_block(masked):
        if n_full > 0:
            if n_full <= 4:
                for c in range(n_full):                    # static offsets
                    _consume_chunk(c * CHUNK_ROWS, CHUNK_ROWS, masked)
            else:
                def body(c, carry):
                    off = pl.multiple_of(c * CHUNK_ROWS, CHUNK_ROWS)
                    _consume_chunk(off, CHUNK_ROWS, masked)
                    return carry
                jax.lax.fori_loop(0, n_full, body, None)
        if rem:
            _consume_chunk(n_full * CHUNK_ROWS, rem, masked)

    if has_partial:
        # Exactly one block per split can run past `total_valid`; every other
        # block takes the unmasked fast path.
        is_partial = (block_row0 + tile_rows) * lanes > total_valid
        pl.when(is_partial)(lambda: _consume_block(True))
        pl.when(jnp.logical_not(is_partial))(lambda: _consume_block(False))
    else:
        _consume_block(False)

    @pl.when(i == n_steps - 1)
    def _finalize():
        # Single lane-dense (1, 3, 8, 128) writeback per split.
        out_ref[0, 0] = acc_gt[...]
        out_ref[0, 1] = acc_neg[...]
        out_ref[0, 2] = acc_pos[...]


def _is_two_core_tpu() -> bool:
    """True on chips with two TensorCores sharing HBM (TPU v7x-style)."""
    try:
        kind = jax.devices()[0].device_kind.lower()
    except Exception:
        return False
    return "v7" in kind


def bbce_with_logits_loss(pred: jax.Array, gt: jax.Array, *,
                          input_budget_bytes: int | None = None) -> jax.Array:
    """Balanced BCEWithLogits loss (AutomaticSAM's `bbce` criterion). Scalar f32."""
    assert pred.shape == gt.shape, "pred and gt must have identical shapes"
    total = int(pred.size)
    assert total > 0

    # Lane-dense zero-copy view: flatten and fold into a (rows, 128) slab.
    flat_p = pred.reshape(-1)
    flat_g = gt.reshape(-1)
    pad = (-total) % LANES
    if pad:
        # TODO(synk): element counts that are not a multiple of 128 need up to
        # 127 padding elements, which materializes an HBM copy; real SAM masks
        # (B*1*H*W with H, W multiples of 16) never take this path.  The pad
        # value is irrelevant: the in-kernel element mask zeroes it out.
        flat_p = jnp.pad(flat_p, (0, pad))
        flat_g = jnp.pad(flat_g, (0, pad))
    rows = (total + pad) // LANES
    pred2 = flat_p.reshape(rows, LANES)
    gt2 = flat_g.reshape(rows, LANES)

    two_core = _is_two_core_tpu()

    # Double-buffered-input VMEM budget: bigger blocks on v5e/v6e (128 MiB
    # VMEM) to amortize the ~0.35 us per-grid-step overhead, capped lower on
    # v7x (64 MiB VMEM per TensorCore, 3.2 TB/s HBM so larger tiles buy less).
    if input_budget_bytes is None:
        input_budget_bytes = (12 if two_core else 16) * 1024 * 1024
    bytes_per_row_dbuf = 2 * LANES * (pred2.dtype.itemsize + gt2.dtype.itemsize)
    budget_rows = max(CHUNK_ROWS,
                      (input_budget_bytes // bytes_per_row_dbuf)
                      // CHUNK_ROWS * CHUNK_ROWS)

    if rows <= budget_rows:
        tile_rows = rows                     # single block per split
    else:
        # At least ~4 reduction steps so input DMA overlaps compute, capped by
        # the VMEM budget; CHUNK_ROWS granularity satisfies every packed
        # dtype's sublane-tiling requirement (8 / 16 / 32 rows).
        quarter = pl.cdiv(pl.cdiv(rows, 4), CHUNK_ROWS) * CHUNK_ROWS
        tile_rows = max(CHUNK_ROWS, min(budget_rows, quarter))
    n_blocks = pl.cdiv(rows, tile_rows)

    # Real 2-TensorCore split only where two cores exist; on single-core
    # chips a plain "parallel" axis changes nothing, so skip the split.
    if two_core and n_blocks >= 2 and n_blocks % 2 == 0:
        num_splits, steps = 2, n_blocks // 2
        dim_sem = (pltpu.CORE_PARALLEL, pltpu.ARBITRARY)
    else:
        num_splits, steps = 1, n_blocks
        dim_sem = ("arbitrary", "arbitrary")

    has_partial = (num_splits * steps * tile_rows * LANES) != total

    kernel = functools.partial(_bbce_kernel, total_valid=total,
                               has_partial=has_partial)
    in_map = lambda s, i: (s * steps + i, 0)

    parts = pl.pallas_call(
        kernel,
        out_shape=jax.ShapeDtypeStruct((num_splits, 3, 8, LANES), jnp.float32),
        grid_spec=pltpu.PrefetchScalarGridSpec(
            num_scalar_prefetch=0,
            grid=(num_splits, steps),
            in_specs=[
                pl.BlockSpec((tile_rows, LANES), in_map),
                pl.BlockSpec((tile_rows, LANES), in_map),
            ],
            out_specs=pl.BlockSpec((1, 3, 8, LANES), lambda s, i: (s, 0, 0, 0)),
            scratch_shapes=[
                pltpu.VMEM((8, LANES), jnp.float32),  # running sum(gt)
                pltpu.VMEM((8, LANES), jnp.float32),  # running sum((1-gt)*softplus(pred))
                pltpu.VMEM((8, LANES), jnp.float32),  # running sum(gt*softplus(-pred))
            ],
        ),
        compiler_params=pltpu.CompilerParams(
            dimension_semantics=dim_sem,
            vmem_limit_bytes=(40 if two_core else 48) * 1024 * 1024,
        ),
    )(pred2, gt2)

    # Tiny final combine (3 * 8 * 128 floats per split).
    s_gt = jnp.sum(parts[:, 0])
    s_neg = jnp.sum(parts[:, 1])
    s_pos = jnp.sum(parts[:, 2])
    n = jnp.float32(total)
    eps = jnp.float32(1e-10)
    count_pos = s_gt + eps
    count_neg = n - s_gt          # == sum(1 - gt) for a {0,1} mask
    ratio = count_neg / count_pos           # pos_weight
    w_neg = count_pos / (count_pos + count_neg)
    return w_neg * (s_neg + ratio * s_pos) / n


def _bbce_reference(pred, gt):
    """Pure-JAX reference mirroring the PyTorch module."""
    pred = pred.astype(jnp.float32)
    gt = gt.astype(jnp.float32)
    eps = 1e-10
    count_pos = jnp.sum(gt) + eps
    count_neg = jnp.sum(1.0 - gt)
    ratio = count_neg / count_pos
    w_neg = count_pos / (count_pos + count_neg)
    sp_neg = jnp.log1p(jnp.exp(-jnp.abs(pred))) + jnp.maximum(-pred, 0.0)
    bce = ratio * gt * sp_neg + (1.0 - gt) * (pred + sp_neg)
    return w_neg * jnp.mean(bce)


if __name__ == "__main__":
    key = jax.random.PRNGKey(0)
    k1, k2, k3, k4, k5, k6 = jax.random.split(key, 6)

    # 1) Small NCHW logit/mask pair (single block, folds to < 8 rows).
    pred = jax.random.normal(k1, (2, 1, 16, 16), dtype=jnp.float32)
    gt = jax.random.bernoulli(k2, p=0.3, shape=(2, 1, 16, 16)).astype(jnp.float32)
    out = jax.block_until_ready(bbce_with_logits_loss(pred, gt))
    ref = jax.block_until_ready(_bbce_reference(pred, gt))
    assert jnp.allclose(out, ref, rtol=1e-5, atol=1e-6), (out, ref)

    # 2) Larger mask, bf16 ground truth streamed in its native dtype; the
    #    default budget gives one big block walked by the chunked inner loop.
    pred_b = jax.random.normal(k3, (2, 1, 512, 640), dtype=jnp.float32)
    gt_b = jax.random.bernoulli(k4, p=0.3, shape=(2, 1, 512, 640)).astype(jnp.bfloat16)
    out_b = jax.block_until_ready(bbce_with_logits_loss(pred_b, gt_b))
    ref_b = jax.block_until_ready(_bbce_reference(pred_b, gt_b))
    assert jnp.allclose(out_b, ref_b, rtol=2e-4, atol=1e-6), (out_b, ref_b)

    # 3) Same data with a small forced budget: multi-block reduction with a
    #    partially out-of-bounds last block (exercises the gated element mask).
    out_c = jax.block_until_ready(
        bbce_with_logits_loss(pred_b, gt_b, input_budget_bytes=1_179_648))
    assert jnp.allclose(out_c, ref_b, rtol=2e-4, atol=1e-6), (out_c, ref_b)

    # 4) Ragged element count (not a multiple of 128): pad fallback plus the
    #    in-kernel element mask keep the result exact.
    pred_r = jax.random.normal(k5, (1, 1, 13, 21), dtype=jnp.float32)
    gt_r = jax.random.bernoulli(k6, p=0.4, shape=(1, 1, 13, 21)).astype(jnp.float32)
    out_r = jax.block_until_ready(bbce_with_logits_loss(pred_r, gt_r))
    ref_r = jax.block_until_ready(_bbce_reference(pred_r, gt_r))
    assert jnp.allclose(out_r, ref_r, rtol=1e-5, atol=1e-6), (out_r, ref_r)

    print("KERNEL_OK")
</pallas_src>

<mosaic_0001>
module attributes {stable_mosaic.version = 11 : i64} {
  func.func @_bbce_kernel(%arg0: i32, %arg1: i32, %arg2: memref<4x128xf32, #tpu.memory_space<vmem>>, %arg3: memref<4x128xf32, #tpu.memory_space<vmem>>, %arg4: memref<1x3x8x128xf32, #tpu.memory_space<vmem>>, %arg5: memref<8x128xf32, #tpu.memory_space<vmem>>, %arg6: memref<8x128xf32, #tpu.memory_space<vmem>>, %arg7: memref<8x128xf32, #tpu.memory_space<vmem>>) attributes {dimension_semantics = [#tpu.dimension_semantics<arbitrary>, #tpu.dimension_semantics<arbitrary>], iteration_bounds = array<i64: 1, 1>, scalar_prefetch = 0 : i64, scratch_operands = 3 : i64, tpu.core_type = #tpu.core_type<tc>, window_params = [{transform_indices = @transform_0, window_bounds = array<i64: 4, 128>}, {transform_indices = @transform_1, window_bounds = array<i64: 4, 128>}, {transform_indices = @transform_2, window_bounds = array<i64: 1, 3, 8, 128>}]} {
    %c0_i32 = arith.constant 0 : i32
    %0 = arith.cmpi eq, %arg1, %c0_i32 : i32
    %1 = arith.extui %0 : i1 to i32
    %c0_i32_0 = arith.constant 0 : i32
    %2 = arith.cmpi ne, %1, %c0_i32_0 : i32
    scf.if %2 {
      %cst_24 = arith.constant 0.000000e+00 : f32
      %38 = vector.broadcast %cst_24 : f32 to vector<8x128xf32>
      %c0_25 = arith.constant 0 : index
      %c0_26 = arith.constant 0 : index
      %39 = vector.load %arg5[%c0_25, %c0_26] : memref<8x128xf32, #tpu.memory_space<vmem>>, vector<8x128xf32>
      tpu.vector_store %arg5[%c0_25, %c0_26], %38 {strides = array<i32>} : memref<8x128xf32, #tpu.memory_space<vmem>>, vector<8x128xf32>,
      %cst_27 = arith.constant 0.000000e+00 : f32
      %40 = vector.broadcast %cst_27 : f32 to vector<8x128xf32>
      %c0_28 = arith.constant 0 : index
      %c0_29 = arith.constant 0 : index
      %41 = vector.load %arg6[%c0_28, %c0_29] : memref<8x128xf32, #tpu.memory_space<vmem>>, vector<8x128xf32>
      tpu.vector_store %arg6[%c0_28, %c0_29], %40 {strides = array<i32>} : memref<8x128xf32, #tpu.memory_space<vmem>>, vector<8x128xf32>,
      %cst_30 = arith.constant 0.000000e+00 : f32
      %42 = vector.broadcast %cst_30 : f32 to vector<8x128xf32>
      %c0_31 = arith.constant 0 : index
      %c0_32 = arith.constant 0 : index
      %43 = vector.load %arg7[%c0_31, %c0_32] : memref<8x128xf32, #tpu.memory_space<vmem>>, vector<8x128xf32>
      tpu.vector_store %arg7[%c0_31, %c0_32], %42 {strides = array<i32>} : memref<8x128xf32, #tpu.memory_space<vmem>>, vector<8x128xf32>,
    } else {
    }
    %c0 = arith.constant 0 : index
    %c0_1 = arith.constant 0 : index
    %3 = vector.load %arg2[%c0, %c0_1] : memref<4x128xf32, #tpu.memory_space<vmem>>, vector<4x128xf32>
    %c0_2 = arith.constant 0 : index
    %c0_3 = arith.constant 0 : index
    %4 = vector.load %arg3[%c0_2, %c0_3] : memref<4x128xf32, #tpu.memory_space<vmem>>, vector<4x128xf32>
    %5 = math.absf %3 : vector<4x128xf32>
    %cst = arith.constant 0.000000e+00 : f32
    %6 = vector.broadcast %cst : f32 to vector<4x128xf32>
    %7 = arith.subf %6, %5 : vector<4x128xf32>
    %8 = math.exp %7 : vector<4x128xf32>
    %9 = math.log1p %8 : vector<4x128xf32>
    %cst_4 = arith.constant 0.000000e+00 : f32
    %10 = vector.broadcast %cst_4 : f32 to vector<4x128xf32>
    %11 = arith.subf %10, %3 : vector<4x128xf32>
    %cst_5 = arith.constant 0.000000e+00 : f32
    %12 = vector.broadcast %cst_5 : f32 to vector<4x128xf32>
    %13 = arith.maximumf %11, %12 : vector<4x128xf32>
    %14 = arith.addf %9, %13 : vector<4x128xf32>
    %15 = arith.mulf %4, %14 : vector<4x128xf32>
    %cst_6 = arith.constant 1.000000e+00 : f32
    %16 = vector.broadcast %cst_6 : f32 to vector<4x128xf32>
    %17 = arith.subf %16, %4 : vector<4x128xf32>
    %18 = arith.addf %3, %14 : vector<4x128xf32>
    %19 = arith.mulf %17, %18 : vector<4x128xf32>
    %c0_7 = arith.constant 0 : index
    %c0_8 = arith.constant 0 : index
    %20 = vector.load %arg5[%c0_7, %c0_8] : memref<8x128xf32, #tpu.memory_space<vmem>>, vector<1x128xf32>
    %cst_9 = arith.constant dense<0.000000e+00> : vector<128xf32>
    %21 = vector.multi_reduction <add>, %4, %cst_9 [0] : vector<4x128xf32> to vector<128xf32>
    %22 = vector.shape_cast %21 : vector<128xf32> to vector<1x128xf32>
    %23 = arith.addf %20, %22 : vector<1x128xf32>
    %c0_10 = arith.constant 0 : index
    %c0_11 = arith.constant 0 : index
    %24 = vector.load %arg5[%c0_10, %c0_11] : memref<8x128xf32, #tpu.memory_space<vmem>>, vector<1x128xf32>
    tpu.vector_store %arg5[%c0_10, %c0_11], %23 {strides = array<i32>} : memref<8x128xf32, #tpu.memory_space<vmem>>, vector<1x128xf32>,
    %c0_12 = arith.constant 0 : index
    %c0_13 = arith.constant 0 : index
    %25 = vector.load %arg7[%c0_12, %c0_13] : memref<8x128xf32, #tpu.memory_space<vmem>>, vector<1x128xf32>
    %cst_14 = arith.constant dense<0.000000e+00> : vector<128xf32>
    %26 = vector.multi_reduction <add>, %15, %cst_14 [0] : vector<4x128xf32> to vector<128xf32>
    %27 = vector.shape_cast %26 : vector<128xf32> to vector<1x128xf32>
    %28 = arith.addf %25, %27 : vector<1x128xf32>
    %c0_15 = arith.constant 0 : index
    %c0_16 = arith.constant 0 : index
    %29 = vector.load %arg7[%c0_15, %c0_16] : memref<8x128xf32, #tpu.memory_space<vmem>>, vector<1x128xf32>
    tpu.vector_store %arg7[%c0_15, %c0_16], %28 {strides = array<i32>} : memref<8x128xf32, #tpu.memory_space<vmem>>, vector<1x128xf32>,
    %c0_17 = arith.constant 0 : index
    %c0_18 = arith.constant 0 : index
    %30 = vector.load %arg6[%c0_17, %c0_18] : memref<8x128xf32, #tpu.memory_space<vmem>>, vector<1x128xf32>
    %cst_19 = arith.constant dense<0.000000e+00> : vector<128xf32>
    %31 = vector.multi_reduction <add>, %19, %cst_19 [0] : vector<4x128xf32> to vector<128xf32>
    %32 = vector.shape_cast %31 : vector<128xf32> to vector<1x128xf32>
    %33 = arith.addf %30, %32 : vector<1x128xf32>
    %c0_20 = arith.constant 0 : index
    %c0_21 = arith.constant 0 : index
    %34 = vector.load %arg6[%c0_20, %c0_21] : memref<8x128xf32, #tpu.memory_space<vmem>>, vector<1x128xf32>
    tpu.vector_store %arg6[%c0_20, %c0_21], %33 {strides = array<i32>} : memref<8x128xf32, #tpu.memory_space<vmem>>, vector<1x128xf32>,
    %c0_i32_22 = arith.constant 0 : i32
    %35 = arith.cmpi eq, %arg1, %c0_i32_22 : i32
    %36 = arith.extui %35 : i1 to i32
    %c0_i32_23 = arith.constant 0 : i32
    %37 = arith.cmpi ne, %36, %c0_i32_23 : i32
    scf.if %37 {
      %c0_24 = arith.constant 0 : index
      %c0_25 = arith.constant 0 : index
      %38 = vector.load %arg5[%c0_24, %c0_25] : memref<8x128xf32, #tpu.memory_space<vmem>>, vector<8x128xf32>
      %c0_26 = arith.constant 0 : index
      %c0_27 = arith.constant 0 : index
      %c0_28 = arith.constant 0 : index
      %c0_29 = arith.constant 0 : index
      %39 = vector.load %arg4[%c0_26, %c0_27, %c0_28, %c0_29] : memref<1x3x8x128xf32, #tpu.memory_space<vmem>>, vector<1x1x8x128xf32>
      %40 = vector.shape_cast %39 : vector<1x1x8x128xf32> to vector<8x128xf32>
      %41 = vector.shape_cast %38 : vector<8x128xf32> to vector<1x1x8x128xf32>
      tpu.vector_store %arg4[%c0_26, %c0_27, %c0_28, %c0_29], %41 {strides = array<i32>} : memref<1x3x8x128xf32, #tpu.memory_space<vmem>>, vector<1x1x8x128xf32>,
      %c0_30 = arith.constant 0 : index
      %c0_31 = arith.constant 0 : index
      %42 = vector.load %arg6[%c0_30, %c0_31] : memref<8x128xf32, #tpu.memory_space<vmem>>, vector<8x128xf32>
      %c0_32 = arith.constant 0 : index
      %c1 = arith.constant 1 : index
      %c0_33 = arith.constant 0 : index
      %c0_34 = arith.constant 0 : index
      %43 = vector.load %arg4[%c0_32, %c1, %c0_33, %c0_34] : memref<1x3x8x128xf32, #tpu.memory_space<vmem>>, vector<1x1x8x128xf32>
      %44 = vector.shape_cast %43 : vector<1x1x8x128xf32> to vector<8x128xf32>
      %45 = vector.shape_cast %42 : vector<8x128xf32> to vector<1x1x8x128xf32>
      tpu.vector_store %arg4[%c0_32, %c1, %c0_33, %c0_34], %45 {strides = array<i32>} : memref<1x3x8x128xf32, #tpu.memory_space<vmem>>, vector<1x1x8x128xf32>,
      %c0_35 = arith.constant 0 : index
      %c0_36 = arith.constant 0 : index
      %46 = vector.load %arg7[%c0_35, %c0_36] : memref<8x128xf32, #tpu.memory_space<vmem>>, vector<8x128xf32>
      %c0_37 = arith.constant 0 : index
      %c2 = arith.constant 2 : index
      %c0_38 = arith.constant 0 : index
      %c0_39 = arith.constant 0 : index
      %47 = vector.load %arg4[%c0_37, %c2, %c0_38, %c0_39] : memref<1x3x8x128xf32, #tpu.memory_space<vmem>>, vector<1x1x8x128xf32>
      %48 = vector.shape_cast %47 : vector<1x1x8x128xf32> to vector<8x128xf32>
      %49 = vector.shape_cast %46 : vector<8x128xf32> to vector<1x1x8x128xf32>
      tpu.vector_store %arg4[%c0_37, %c2, %c0_38, %c0_39], %49 {strides = array<i32>} : memref<1x3x8x128xf32, #tpu.memory_space<vmem>>, vector<1x1x8x128xf32>,
    } else {
    }
    return
  }
  func.func @transform_0(%arg0: i32, %arg1: i32) -> (i32, i32) {
    %c1_i32 = arith.constant 1 : i32
    %0 = arith.muli %arg0, %c1_i32 : i32
    %1 = arith.addi %0, %arg1 : i32
    %c0_i32 = arith.constant 0 : i32
    %c0_i32_0 = arith.constant 0 : i32
    return %1, %c0_i32 : i32, i32
  }
  func.func @transform_1(%arg0: i32, %arg1: i32) -> (i32, i32) {
    %c1_i32 = arith.constant 1 : i32
    %0 = arith.muli %arg0, %c1_i32 : i32
    %1 = arith.addi %0, %arg1 : i32
    %c0_i32 = arith.constant 0 : i32
    %c0_i32_0 = arith.constant 0 : i32
    return %1, %c0_i32 : i32, i32
  }
  func.func @transform_2(%arg0: i32, %arg1: i32) -> (i32, i32, i32, i32) {
    %c0_i32 = arith.constant 0 : i32
    %c0_i32_0 = arith.constant 0 : i32
    %c0_i32_1 = arith.constant 0 : i32
    %c0_i32_2 = arith.constant 0 : i32
    return %arg0, %c0_i32, %c0_i32_0, %c0_i32_1 : i32, i32, i32, i32
  }
}

</mosaic_0001>

<bundles_post_ra>
// kernel: tpu_custom_call.1
= control target key start
LH: loop header
LB: loop body
LE: loop exit
PB: predicated region body
PF: predicated region fallthrough
CT: control target
= control target key end

     0   :  { %7 = vsyncpa [#allocation6], 0  ;;  %s260_s0 = inlined_call_operand.hbm [shape: f32[4,128], index: 0, kind: input, shape index: {}]   ;;  %s261_s1 = inlined_call_operand.hbm [shape: f32[4,128], index: 1, kind: input, shape index: {}]   ;;  %s262_s2 = inlined_call_operand.hbm [shape: f32[1,3,8,128], index: 2, kind: output, shape index: {}]  }
   0x1   :  { %8 = vsyncpa [#allocation9], 0 }
   0x2   :  { %9 = vsyncpa [#allocation7], 0  ;;  %s18_s11 = sshll.u32 %s260_s0, 4  ;;  %s227_s12 = smov [#allocation5]   ;;  %s19_s11 = int_to_ptr.hbm [resolvable:$true] %s18_s11 }
   0x3   :  { %s20_s13 = sshll.u32 %s227_s12, 4  ;;  %s32_s16 = sshll.u32 %s261_s1, 4  ;;  %s21_s13 = int_to_ptr.vmem [resolvable:$true] %s20_s13  ;;  %s33_s16 = int_to_ptr.hbm [resolvable:$true] %s32_s16 }
   0x4   :  { %23 = dma.hbm_to_vmem [thread:$0]  %s19_s11, 64, %s21_s13, [#allocation6]  }
   0x5   :  { %s228_s17 = smov [#allocation8]  }
   0x6   :  { %s34_s18 = sshll.u32 %s228_s17, 4  ;;  %s35_s18 = int_to_ptr.vmem [resolvable:$true] %s34_s18 }
   0x7   :  { %37 = dma.hbm_to_vmem [thread:$0]  %s33_s16, 64, %s35_s18, [#allocation9]  }
   0x8   :  { %221 = dma.done.wait [#allocation6], 64  }
   0x9   :  { %222 = vsyncadd [#allocation6], 4294967232 }
   0xa   :  { %223 = dma.done.wait [#allocation9], 64  }
   0xb   :  { %224 = vsyncadd [#allocation9], 4294967232  ;;  %v229_v0 = vmov 0.0   ;;  %vm78_vm0 = vcmask 1043456   ;;  %v56_v1 = vld [vmem:[#allocation8] sm:$0xf] }
   0xc   :  { %52 = vst [vmem:[#allocation2] sm:$0xff] %v229_v0  ;;  %v55_v2 = vld [vmem:[#allocation5] sm:$0xf]  ;;  %v79_v3 = vsel %vm78_vm0, %v56_v1, 0.0  ;;  %v74_v28 = vsub.f32 1.0, %v56_v1  ;;  %s230_s0 = smov [#allocation10]  }
   0xd   :  { %53 = vst [vmem:[#allocation3] sm:$0xff] %v229_v0  ;;  %v57_v4 = vand.u32 2147483647, %v55_v2  ;;  %v80_v5 = vrot.slane %v79_v3, 4  ;;  %v70_v20 = vsub.f32 0.0, %v55_v2  ;;  %s123_s1 = sshll.u32 %s230_s0, 4  ;;  %s124_s1 = int_to_ptr.vmem [resolvable:$true] %s123_s1 }
   0xe   :  { %54 = vst [vmem:[#allocation4] sm:$0xff] %v229_v0  ;;  %s125_s21 = sshll.u32 %s262_s2, 4  ;;  %s231_s22 = smov 128   ;;  %s126_s21 = int_to_ptr.hbm [resolvable:$true] %s125_s21 }
   0xf   :  { %v58_v6 = vsub.f32 0.0, %v57_v4  ;;  %v81_v7 = vadd.f32 %v80_v5, %v79_v3  ;;  %v71_v23 = vmax.f32 %v70_v20, 0.0  ;;  %s232_s23 = smov 8  }
  0x11   :  { %v59_v8 = vmul.f32 1.442695, %v58_v6  ;;  %v82_v9 = vrot.slane %v81_v7, 2 }
  0x13   :  { %145 = vpow2.f32 %v59_v8  ;;  %v83_v10 = vadd.f32 %v82_v9, %v81_v7  ;;  %v77_v12 = vld [vmem:[#allocation2] sm:$0x1] }
  0x14   :  { %v98_v46 = vld [vmem:[#allocation3] sm:$0x1] }
  0x15   :  { %v84_v11 = vrot.slane %v83_v10, 1  ;;  %v88_v43 = vld [vmem:[#allocation4] sm:$0x1] }
  0x17   :  { %v85_v13 = vadd.f32 %v84_v11, %v83_v10 }
  0x19   :  { %v146_v14 = vpop.eup %145  ;;  %v86_v15 = vadd.f32 %v85_v13, %v77_v12 }
  0x1a   :  { %v61_v16 = vadd.f32 1.0, %v146_v14  ;;  %v64_v17 = vmul.f32 -0.5, %v146_v14  ;;  %v67_v19 = vand.u32 2147483647, %v146_v14 }
  0x1b   :  { %87 = vst [vmem:[#allocation2] sm:$0x1] %v86_v15 }
  0x1c   :  { %147 = vlog2.f32 %v61_v16  ;;  %v65_v18 = vadd.f32 1.0, %v64_v17  ;;  %vm68_vm1 = vcmp.lt.f32.partialorder %v67_v19, 0.0004427343 }
  0x1e   :  { %v66_v21 = vmul.f32 %v146_v14, %v65_v18 }
  0x22   :  { %v148_v22 = vpop.eup %147  ;;  %v111_v25 = vld [vmem:[#allocation2] sm:$0xff] }
  0x23   :  { %v63_v24 = vmul.f32 0.6931472, %v148_v22  ;;  %112 = vst [vmem:[#allocation10] sm:$0xff] %v111_v25 }
  0x25   :  { %v69_v26 = vsel %vm68_vm1, %v66_v21, %v63_v24 }
  0x26   :  { %v72_v27 = vadd.f32 %v71_v23, %v69_v26 }
  0x28   :  { %v73_v29 = vmul.f32 %v72_v27, %v56_v1  ;;  %v75_v30 = vadd.f32 %v72_v27, %v55_v2 }
  0x2a   :  { %v89_v31 = vsel %vm78_vm0, %v73_v29, 0.0  ;;  %v76_v32 = vmul.f32 %v75_v30, %v74_v28 }
  0x2b   :  { %v90_v33 = vrot.slane %v89_v31, 4 }
  0x2c   :  { %v99_v34 = vsel %vm78_vm0, %v76_v32, 0.0 }
  0x2d   :  { %v91_v35 = vadd.f32 %v90_v33, %v89_v31  ;;  %v100_v36 = vrot.slane %v99_v34, 4 }
  0x2f   :  { %v92_v37 = vrot.slane %v91_v35, 2  ;;  %v101_v38 = vadd.f32 %v100_v36, %v99_v34 }
  0x31   :  { %v93_v39 = vadd.f32 %v92_v37, %v91_v35  ;;  %v102_v40 = vrot.slane %v101_v38, 2 }
  0x33   :  { %v94_v41 = vrot.slane %v93_v39, 1  ;;  %v103_v42 = vadd.f32 %v102_v40, %v101_v38 }
  0x35   :  { %v95_v44 = vadd.f32 %v94_v41, %v93_v39  ;;  %v104_v45 = vrot.slane %v103_v42, 1 }
  0x37   :  { %v96_v47 = vadd.f32 %v95_v44, %v88_v43  ;;  %v105_v48 = vadd.f32 %v104_v45, %v103_v42 }
  0x39   :  { %97 = vst [vmem:[#allocation4] sm:$0x1] %v96_v47  ;;  %v106_v49 = vadd.f32 %v105_v48, %v98_v46 }
  0x3b   :  { %107 = vst [vmem:[#allocation3] sm:$0x1] %v106_v49 }
  0x40   :  { %v116_v50 = vld [vmem:[#allocation4] sm:$0xff] }
  0x41   :  { %118 = vst [vmem:[#allocation10 + $0x10] sm:$0xff] %v116_v50 }
  0x42   :  { %v113_v51 = vld [vmem:[#allocation3] sm:$0xff] }
  0x43   :  { %115 = vst [vmem:[#allocation10 + $0x8] sm:$0xff] %v113_v51 }
  0x44   :  { %131 = dma.vmem_to_hbm [thread:$0]  %s124_s1, 384, %s126_s21, [#allocation7], %s231_s22, %s231_s22, %s232_s23  }
  0x45   :  { %225 = dma.done.wait [#allocation7], 384  }
  0x46   :  { %226 = vsyncadd [#allocation7], 4294966912 }
  0x47   :  { %136 = vsyncpa [#allocation6], 1 }
  0x48   :  { %137 = vsyncpa [#allocation9], 1 }
  0x49   :  { %138 = vsyncpa [#allocation7], 1 }

</bundles_post_ra>
